<compile_context>
chip_gen: v6e
topology: v6e:2x2x1
jax: 0.10.0
libtpu: 0.0.40
codegen_flags: <defaults>
</compile_context>

<pallas_src>
import functools

import jax
import jax.numpy as jnp
from jax.experimental import pallas as pl
from jax.experimental.pallas import tpu as pltpu

_LANE = 128


def _round_up(x, m):
    return (x + m - 1) // m * m


def _num_tensorcores():
    """2 only on chips exposing two TensorCores per device (v4/v5p/v7x)."""
    try:
        kind = jax.devices()[0].device_kind.lower()
    except Exception:  # pragma: no cover - device query failure -> safe default
        return 1
    if ("v7" in kind) or ("7x" in kind) or ("v4" in kind) or ("v5p" in kind):
        return 2
    return 1


def _loss_kernel(x_ref, w_ref, acc_ref, *, n_valid, block_rows, n_blocks,
                 aligned):
    # x_ref  : (2, block_rows, 128) VMEM tile  -- class-major logits
    # w_ref  : (block_rows, 128)    VMEM tile  -- weights, native dtype
    # acc_ref: (8, 128) f32 output block, resident across the inner
    #          ("arbitrary") grid axis (per-core partial sums).
    p = pl.program_id(0)
    i = pl.program_id(1)

    @pl.when(i == 0)
    def _():
        acc_ref[...] = jnp.zeros_like(acc_ref)

    x0 = x_ref[0].astype(jnp.float32)          # (block_rows, 128)
    x1 = x_ref[1].astype(jnp.float32)
    w = w_ref[...].astype(jnp.float32)

    d = x1 - x0
    # Stable softplus(d); w*entropy1 + (1-w)*entropy0 == softplus(d) - w*d.
    softplus = jnp.maximum(d, 0.0) + jnp.log1p(jnp.exp(-jnp.abs(d)))
    w_entropy = softplus - w * d               # (block_rows, 128)

    if aligned:
        # No padded / out-of-bounds elements anywhere: mask-free accumulate.
        acc_ref[...] += w_entropy.reshape(-1, 8, _LANE).sum(axis=0)
    else:
        # Unclamped global row-block index (the index_map clamps the DMA to
        # the last real block; duplicate/overrun blocks are fully masked
        # because their sample indices are all >= n_valid).
        rb = p * pl.num_programs(1) + i
        is_tail = rb >= (n_blocks - 1)

        @pl.when(jnp.logical_not(is_tail))
        def _():
            acc_ref[...] += w_entropy.reshape(-1, 8, _LANE).sum(axis=0)

        @pl.when(is_tail)
        def _():
            row = jax.lax.broadcasted_iota(jnp.int32, w_entropy.shape, 0)
            col = jax.lax.broadcasted_iota(jnp.int32, w_entropy.shape, 1)
            # int32 sample index: only overflows for N approaching 2^31.
            samp = (rb * block_rows + row) * _LANE + col
            masked = jnp.where(samp < n_valid, w_entropy, 0.0)
            acc_ref[...] += masked.reshape(-1, 8, _LANE).sum(axis=0)


@functools.partial(jax.jit, static_argnames=("block_rows",))
def my_loss_pallas(outputs, targets, weight_label, *, block_rows=2048):
    # `targets` is unused in the reference forward pass; kept for API parity.
    del targets
    n, c = outputs.shape
    assert c == 2, "my_loss indexes classes 0 and 1 (binary)"

    # Narrow-dtype weights straight into the kernel (cast happens in-kernel).
    if weight_label.dtype == jnp.bool_:
        weight_label = weight_label.astype(jnp.int8)
    w = weight_label.reshape(n)

    # Lane-dense plumbing: pad only to 128-sample granularity (and only when
    # needed), then ONE contiguous class-major transpose of the logits.
    rows = -(-n // _LANE)
    pad = rows * _LANE - n
    x = outputs
    if pad:
        x = jnp.pad(x, ((0, pad), (0, 0)))
        w = jnp.pad(w, ((0, pad),))
    xt = x.T.reshape(2, rows, _LANE)           # (2, rows, 128), class-major
    w2d = w.reshape(rows, _LANE)               # (rows, 128), native dtype

    br = min(_round_up(block_rows, 8), _round_up(rows, 8))
    n_blocks = -(-rows // br)
    num_cores = _num_tensorcores() if n_blocks >= 2 else 1
    steps = -(-n_blocks // num_cores)
    aligned = (n == num_cores * steps * br * _LANE)

    kernel = functools.partial(_loss_kernel, n_valid=n, block_rows=br,
                               n_blocks=n_blocks, aligned=aligned)

    def _rb(p, i):
        # Clamp so the DMA never starts past the last real row-block; the
        # kernel's sample-index mask zeroes any duplicated/overrun work.
        return jnp.minimum(p * steps + i, n_blocks - 1)

    x_spec = pl.BlockSpec((2, br, _LANE), lambda p, i: (0, _rb(p, i), 0))
    w_spec = pl.BlockSpec((br, _LANE), lambda p, i: (_rb(p, i), 0))

    partials = pl.pallas_call(
        kernel,
        out_shape=jax.ShapeDtypeStruct((num_cores * 8, _LANE), jnp.float32),
        grid_spec=pltpu.PrefetchScalarGridSpec(
            num_scalar_prefetch=0,
            grid=(num_cores, steps),
            in_specs=[x_spec, w_spec],
            out_specs=pl.BlockSpec((8, _LANE), lambda p, i: (p, 0)),
        ),
        compiler_params=pltpu.CompilerParams(
            dimension_semantics=("parallel", "arbitrary"),
            vmem_limit_bytes=32 * 1024 * 1024),
    )(xt, w2d)

    # Tiny epilogue reduction of the per-lane / per-core partial sums.
    return jnp.sum(partials)


def _my_loss_ref(outputs, targets, weight_label):
    del targets
    wl = weight_label.astype(jnp.float32)
    logp = jax.nn.log_softmax(outputs.astype(jnp.float32), axis=1)
    entropy = -logp
    w_entropy = wl * entropy[:, 1] + (1.0 - wl) * entropy[:, 0]
    return jnp.sum(w_entropy)


if __name__ == "__main__":
    key = jax.random.PRNGKey(0)
    k1, k2, k3 = jax.random.split(key, 3)

    # Small shape consistent with the module: (N, 2) logits.
    N, C = 16, 2
    outputs = jax.random.normal(k1, (N, C), dtype=jnp.float32)
    targets = jax.random.randint(k2, (N,), 0, 2)        # unused by the loss
    weight_label = jax.random.randint(k3, (N,), 0, 2)   # int 0/1 labels

    loss = jax.block_until_ready(my_loss_pallas(outputs, targets, weight_label))
    ref = _my_loss_ref(outputs, targets, weight_label)
    assert jnp.allclose(loss, ref, rtol=1e-5, atol=1e-4), (loss, ref)

    # Second check: multi-block grid + ragged tail (N % 128 != 0) + small tiles.
    k4, k5, k6 = jax.random.split(jax.random.PRNGKey(1), 3)
    N2 = 2500
    outputs2 = jax.random.normal(k4, (N2, C), dtype=jnp.float32)
    targets2 = jax.random.randint(k5, (N2,), 0, 2)
    weight2 = jax.random.randint(k6, (N2,), 0, 2)
    loss2 = jax.block_until_ready(
        my_loss_pallas(outputs2, targets2, weight2, block_rows=8))
    ref2 = _my_loss_ref(outputs2, targets2, weight2)
    assert jnp.allclose(loss2, ref2, rtol=1e-5, atol=1e-3), (loss2, ref2)

    print("KERNEL_OK")
</pallas_src>

<mosaic_0001>
module attributes {stable_mosaic.version = 11 : i64} {
  func.func @_loss_kernel(%arg0: i32, %arg1: i32, %arg2: memref<2x8x128xf32, #tpu.memory_space<vmem>>, %arg3: memref<8x128xi32, #tpu.memory_space<vmem>>, %arg4: memref<8x128xf32, #tpu.memory_space<vmem>>) attributes {dimension_semantics = [#tpu.dimension_semantics<parallel>, #tpu.dimension_semantics<arbitrary>], iteration_bounds = array<i64: 1, 1>, scalar_prefetch = 0 : i64, scratch_operands = 0 : i64, tpu.core_type = #tpu.core_type<tc>, window_params = [{transform_indices = @transform_0, window_bounds = array<i64: 2, 8, 128>}, {transform_indices = @transform_1, window_bounds = array<i64: 8, 128>}, {transform_indices = @transform_2, window_bounds = array<i64: 8, 128>}]} {
    %c0_i32 = arith.constant 0 : i32
    %0 = arith.cmpi eq, %arg1, %c0_i32 : i32
    %1 = arith.extui %0 : i1 to i32
    %c0_i32_0 = arith.constant 0 : i32
    %2 = arith.cmpi ne, %1, %c0_i32_0 : i32
    scf.if %2 {
      %cst_11 = arith.constant 0.000000e+00 : f32
      %28 = vector.broadcast %cst_11 : f32 to vector<8x128xf32>
      %c0_12 = arith.constant 0 : index
      %c0_13 = arith.constant 0 : index
      %29 = vector.load %arg4[%c0_12, %c0_13] : memref<8x128xf32, #tpu.memory_space<vmem>>, vector<8x128xf32>
      tpu.vector_store %arg4[%c0_12, %c0_13], %28 {strides = array<i32>} : memref<8x128xf32, #tpu.memory_space<vmem>>, vector<8x128xf32>,
    } else {
    }
    %c0 = arith.constant 0 : index
    %c0_1 = arith.constant 0 : index
    %c0_2 = arith.constant 0 : index
    %3 = vector.load %arg2[%c0, %c0_1, %c0_2] : memref<2x8x128xf32, #tpu.memory_space<vmem>>, vector<1x8x128xf32>
    %4 = vector.shape_cast %3 : vector<1x8x128xf32> to vector<8x128xf32>
    %c1 = arith.constant 1 : index
    %c0_3 = arith.constant 0 : index
    %c0_4 = arith.constant 0 : index
    %5 = vector.load %arg2[%c1, %c0_3, %c0_4] : memref<2x8x128xf32, #tpu.memory_space<vmem>>, vector<1x8x128xf32>
    %6 = vector.shape_cast %5 : vector<1x8x128xf32> to vector<8x128xf32>
    %c0_5 = arith.constant 0 : index
    %c0_6 = arith.constant 0 : index
    %7 = vector.load %arg3[%c0_5, %c0_6] : memref<8x128xi32, #tpu.memory_space<vmem>>, vector<8x128xi32>
    %8 = arith.sitofp %7 : vector<8x128xi32> to vector<8x128xf32>
    %9 = arith.subf %6, %4 : vector<8x128xf32>
    %cst = arith.constant 0.000000e+00 : f32
    %10 = vector.broadcast %cst : f32 to vector<8x128xf32>
    %11 = arith.maximumf %9, %10 : vector<8x128xf32>
    %12 = math.absf %9 : vector<8x128xf32>
    %cst_7 = arith.constant 0.000000e+00 : f32
    %13 = vector.broadcast %cst_7 : f32 to vector<8x128xf32>
    %14 = arith.subf %13, %12 : vector<8x128xf32>
    %15 = math.exp %14 : vector<8x128xf32>
    %16 = math.log1p %15 : vector<8x128xf32>
    %17 = arith.addf %11, %16 : vector<8x128xf32>
    %18 = arith.mulf %8, %9 : vector<8x128xf32>
    %19 = arith.subf %17, %18 : vector<8x128xf32>
    %c1_i32 = arith.constant 1 : i32
    %20 = arith.muli %arg0, %c1_i32 : i32
    %21 = arith.addi %20, %arg1 : i32
    %c0_i32_8 = arith.constant 0 : i32
    %22 = arith.cmpi sge, %21, %c0_i32_8 : i32
    %true = arith.constant true
    %23 = arith.xori %22, %true : i1
    %24 = arith.extui %23 : i1 to i32
    %c0_i32_9 = arith.constant 0 : i32
    %25 = arith.cmpi ne, %24, %c0_i32_9 : i32
    scf.if %25 {
      %c0_11 = arith.constant 0 : index
      %c0_12 = arith.constant 0 : index
      %28 = vector.load %arg4[%c0_11, %c0_12] : memref<8x128xf32, #tpu.memory_space<vmem>>, vector<8x128xf32>
      %29 = vector.shape_cast %19 : vector<8x128xf32> to vector<1x8x128xf32>
      %cst_13 = arith.constant dense<0.000000e+00> : vector<8x128xf32>
      %30 = vector.multi_reduction <add>, %29, %cst_13 [0] : vector<1x8x128xf32> to vector<8x128xf32>
      %31 = arith.addf %28, %30 : vector<8x128xf32>
      %c0_14 = arith.constant 0 : index
      %c0_15 = arith.constant 0 : index
      %32 = vector.load %arg4[%c0_14, %c0_15] : memref<8x128xf32, #tpu.memory_space<vmem>>, vector<8x128xf32>
      tpu.vector_store %arg4[%c0_14, %c0_15], %31 {strides = array<i32>} : memref<8x128xf32, #tpu.memory_space<vmem>>, vector<8x128xf32>,
    } else {
    }
    %26 = arith.extui %22 : i1 to i32
    %c0_i32_10 = arith.constant 0 : i32
    %27 = arith.cmpi ne, %26, %c0_i32_10 : i32
    scf.if %27 {
      %28 = tpu.iota {dimensions = array<i32: 0>} : vector<8x128xi32>
      %29 = tpu.iota {dimensions = array<i32: 1>} : vector<8x128xi32>
      %c8_i32 = arith.constant 8 : i32
      %30 = arith.muli %21, %c8_i32 : i32
      %31 = vector.broadcast %30 : i32 to vector<8x128xi32>
      %32 = arith.addi %31, %28 : vector<8x128xi32>
      %c128_i32 = arith.constant 128 : i32
      %33 = vector.broadcast %c128_i32 : i32 to vector<8x128xi32>
      %34 = arith.muli %32, %33 : vector<8x128xi32>
      %35 = arith.addi %34, %29 : vector<8x128xi32>
      %c16_i32 = arith.constant 16 : i32
      %36 = vector.broadcast %c16_i32 : i32 to vector<8x128xi32>
      %37 = arith.cmpi slt, %35, %36 : vector<8x128xi32>
      %cst_11 = arith.constant 0.000000e+00 : f32
      %38 = vector.broadcast %cst_11 : f32 to vector<8x128xf32>
      %39 = arith.select %37, %19, %38 : vector<8x128xi1>, vector<8x128xf32>
      %c0_12 = arith.constant 0 : index
      %c0_13 = arith.constant 0 : index
      %40 = vector.load %arg4[%c0_12, %c0_13] : memref<8x128xf32, #tpu.memory_space<vmem>>, vector<8x128xf32>
      %41 = vector.shape_cast %39 : vector<8x128xf32> to vector<1x8x128xf32>
      %cst_14 = arith.constant dense<0.000000e+00> : vector<8x128xf32>
      %42 = vector.multi_reduction <add>, %41, %cst_14 [0] : vector<1x8x128xf32> to vector<8x128xf32>
      %43 = arith.addf %40, %42 : vector<8x128xf32>
      %c0_15 = arith.constant 0 : index
      %c0_16 = arith.constant 0 : index
      %44 = vector.load %arg4[%c0_15, %c0_16] : memref<8x128xf32, #tpu.memory_space<vmem>>, vector<8x128xf32>
      tpu.vector_store %arg4[%c0_15, %c0_16], %43 {strides = array<i32>} : memref<8x128xf32, #tpu.memory_space<vmem>>, vector<8x128xf32>,
    } else {
    }
    return
  }
  func.func @transform_0(%arg0: i32, %arg1: i32) -> (i32, i32, i32) {
    %c1_i32 = arith.constant 1 : i32
    %0 = arith.muli %arg0, %c1_i32 : i32
    %1 = arith.addi %0, %arg1 : i32
    %c0_i32 = arith.constant 0 : i32
    %2 = arith.minsi %1, %c0_i32 : i32
    %c0_i32_0 = arith.constant 0 : i32
    %c0_i32_1 = arith.constant 0 : i32
    %c0_i32_2 = arith.constant 0 : i32
    return %c0_i32_0, %2, %c0_i32_1 : i32, i32, i32
  }
  func.func @transform_1(%arg0: i32, %arg1: i32) -> (i32, i32) {
    %c1_i32 = arith.constant 1 : i32
    %0 = arith.muli %arg0, %c1_i32 : i32
    %1 = arith.addi %0, %arg1 : i32
    %c0_i32 = arith.constant 0 : i32
    %2 = arith.minsi %1, %c0_i32 : i32
    %c0_i32_0 = arith.constant 0 : i32
    %c0_i32_1 = arith.constant 0 : i32
    return %2, %c0_i32_0 : i32, i32
  }
  func.func @transform_2(%arg0: i32, %arg1: i32) -> (i32, i32) {
    %c0_i32 = arith.constant 0 : i32
    %c0_i32_0 = arith.constant 0 : i32
    return %arg0, %c0_i32 : i32, i32
  }
}

</mosaic_0001>

<bundles_post_ra>
// kernel: my_loss_pallas.1
= control target key start
LH: loop header
LB: loop body
LE: loop exit
PB: predicated region body
PF: predicated region fallthrough
CT: control target
= control target key end

     0   :  { %v517_v10 = vlaneseq  ;;  %s667_s0 = inlined_call_operand.vmem [shape: f32[2,1,128], index: 0, kind: input, shape index: {}]   ;;  %s668_s1 = inlined_call_operand.vmem [shape: s32[1,128], index: 1, kind: input, shape index: {}]   ;;  %s669_s2 = inlined_call_operand.vmem [shape: f32[8,128], index: 2, kind: output, shape index: {}]  }
   0x1   :  { %v37_v0 = vld [vmem:[%s667_s0] sm:$0x1]  ;;  %v39_v1 = vld [vmem:[%s667_s0 + $0x1] sm:$0x1] }
   0x2   :  { %38 = vst [vmem:[#allocation2] sm:$0x1] %v37_v0  ;;  %40 = vst [vmem:[#allocation2 + $0x8] sm:$0x1] %v39_v1  ;;  %v518_v12 = vshrl.u32 %v517_v10, 7  ;;  %v484_v13 = vld [vmem:[%s668_s1] sm:$0xff] }
   0x3   :  { %v520_v15 = vand.u32 127, %v517_v10  ;;  %v485_v19 = vcvt.s32.f32 %v484_v13 }
   0x4   :  { %v524_v16 = vmul.u32 128, %v518_v12 }
   0x6   :  { %v525_v22 = vadd.s32 %v524_v16, %v520_v15 }
   0x8   :  { %vm526_vm1 = vcmp.lt.s32.totalorder %v525_v22, 16 }
   0x9   :  { %v481_v2 = vld [vmem:[#allocation2] sm:$0xff]  ;;  %v483_v3 = vld [vmem:[#allocation2 + $0x8] sm:$0xff] }
   0xa   :  { %v486_v4 = vsub.f32 %v483_v3, %v481_v2 }
   0xc   :  { %v488_v5 = vand.u32 2147483647, %v486_v4  ;;  %v487_v23 = vmax.f32 %v486_v4, 0.0  ;;  %v502_v26 = vmul.f32 %v486_v4, %v485_v19 }
   0xe   :  { %v489_v6 = vsub.f32 0.0, %v488_v5 }
  0x10   :  { %v490_v7 = vmul.f32 1.442695, %v489_v6 }
  0x12   :  { %636 = vpow2.f32 %v490_v7 }
  0x1f   :  { %v637_v8 = vpop.eup %636 }
  0x20   :  { %v492_v9 = vadd.f32 1.0, %v637_v8  ;;  %v495_v11 = vmul.f32 -0.5, %v637_v8  ;;  %v498_v17 = vand.u32 2147483647, %v637_v8 }
  0x22   :  { %638 = vlog2.f32 %v492_v9  ;;  %v496_v14 = vadd.f32 1.0, %v495_v11  ;;  %vm499_vm0 = vcmp.lt.f32.partialorder %v498_v17, 0.0004427343 }
  0x24   :  { %v497_v21 = vmul.f32 %v637_v8, %v496_v14 }
  0x2f   :  { %v639_v18 = vpop.eup %638 }
  0x30   :  { %v494_v20 = vmul.f32 0.6931472, %v639_v18 }
  0x32   :  { %v500_v24 = vsel %vm499_vm0, %v497_v21, %v494_v20 }
  0x33   :  { %v501_v25 = vadd.f32 %v500_v24, %v487_v23 }
  0x35   :  { %v503_v27 = vsub.f32 %v501_v25, %v502_v26 }
  0x37   :  { %v527_v28 = vsel %vm526_vm1, %v503_v27, 0.0 }
  0x38   :  { %531 = vst [vmem:[%s669_s2] sm:$0xff] %v527_v28 }

</bundles_post_ra>
